<compile_context>
chip_gen: v7x
topology: tpu7x:2x2x1
jax: 0.10.0
libtpu: 0.0.40
codegen_flags: <defaults>
</compile_context>

<pallas_src>
import jax
import jax.numpy as jnp
from jax import lax
from jax.experimental import pallas as pl
from jax.experimental.pallas import tpu as pltpu

# ---- model hyper-parameters (small, consistent with the module) -------------
N_HEAD = 2
EMBED = 16           # d_model / embed_size
D_HEAD = 2
CLASSES = 2
MAX_LEN = 8          # keep seq_len == max_len (required by the .view in forward)
SEQ = MAX_LEN
BATCH = 2
VOCAB = 100000
SCALE = 1.0 / (D_HEAD ** 0.5)
HD = N_HEAD * D_HEAD                    # 4
FLAT = EMBED * MAX_LEN                  # 128  (final.in_features)
ROWS = SEQ * BATCH * EMBED // FLAT      # 2    (rows of output.view(-1, FLAT))
K_PER_ROW = FLAT // (BATCH * EMBED)     # 4    (seq positions per flattened row)


# -----------------------------------------------------------------------------
# Fused kernel: MHA + residual + final linear + cross-entropy (mean reduction)
# -----------------------------------------------------------------------------
def fused_kernel(h_ref, wqkv_ref, wo_ref, wf_ref, bf_ref, yoh_ref,
                 logits_ref, loss_ref):
    """
    h_ref:    (BATCH*SEQ, EMBED)   batch-major rows: row b*SEQ + i == h[i, b, :]
    wqkv_ref: (EMBED, 3*HD)        [Wq | Wk | Wv], already transposed
    wo_ref:   (N_HEAD, D_HEAD, EMBED)  per-head blocks of o_net.weight.T
    wf_ref:   (FLAT, CLASSES)      final.weight.T
    bf_ref:   (1, CLASSES)         final.bias
    yoh_ref:  (ROWS, CLASSES)      one-hot labels
    logits_ref: (ROWS, CLASSES)    output logits
    loss_ref:   (1, 1)             mean CE loss
    """
    h_rows = h_ref[...]                                              # (B*L, E)
    # Fused Q/K/V projection for every (seq, batch) row: one MXU matmul.
    qkv = jnp.dot(h_rows, wqkv_ref[...],
                  preferred_element_type=jnp.float32)                # (B*L, 3*HD)

    # Per-batch attention (B=2, fully unrolled).  Rows for batch b are the
    # contiguous, 8-aligned block [b*SEQ, (b+1)*SEQ) -- no strided middle-dim
    # slicing.  Heads accumulate through per-head Wo blocks (no lane concat).
    out_batches = []
    for b in range(BATCH):
        r0 = b * SEQ
        out_b = h_rows[r0:r0 + SEQ, :]                               # residual (L, E)
        for n in range(N_HEAD):
            c = n * D_HEAD
            q = qkv[r0:r0 + SEQ, c:c + D_HEAD]                       # (L, D)
            k = qkv[r0:r0 + SEQ, HD + c:HD + c + D_HEAD]             # (L, D)
            v = qkv[r0:r0 + SEQ, 2 * HD + c:2 * HD + c + D_HEAD]     # (L, D)
            # att_score[i, j] = <q_i, k_j> * scale  (einsum 'ibnd,jbnd->ijbn'),
            # contracting dim 1 of both operands (no explicit transpose).
            s = lax.dot_general(q, k, (((1,), (1,)), ((), ())),
                                preferred_element_type=jnp.float32) * SCALE
            # softmax over j (PyTorch: F.softmax(att_score, dim=1))
            m = jnp.max(s, axis=1, keepdims=True)
            p = jnp.exp(s - m)
            p = p * pl.reciprocal(jnp.sum(p, axis=1, keepdims=True), approx=True)
            # att_vec ('ijbn,jbnd->ibnd') projected by this head's Wo block.
            av = jnp.dot(p, v, preferred_element_type=jnp.float32)   # (L, D)
            out_b = out_b + jnp.dot(av, wo_ref[n],
                                    preferred_element_type=jnp.float32)
        out_batches.append(out_b)                                    # (L, E)

    # output.view(-1, EMBED*MAX_LEN): with output laid out (seq, batch, embed),
    # flattened row r is the lane concatenation over k of
    #   [output[r*K+k, 0, :], output[r*K+k, 1, :]],  k = 0..K_PER_ROW-1.
    # Built with static row slices + lane concats (no in-kernel reshape).
    out2 = jnp.concatenate(out_batches, axis=1)                      # (L, B*E)
    flat_rows = []
    for r in range(ROWS):
        i0 = r * K_PER_ROW
        strips = [out2[i0 + k:i0 + k + 1, :] for k in range(K_PER_ROW)]
        flat_rows.append(jnp.concatenate(strips, axis=1))            # (1, FLAT)
    flat = jnp.concatenate(flat_rows, axis=0)                        # (ROWS, FLAT)

    # Final linear + cross-entropy, all in-register; one (2,128)@(128,2) matmul.
    logits = jnp.dot(flat, wf_ref[...],
                     preferred_element_type=jnp.float32) + bf_ref[...]
    logits_ref[...] = logits

    m = jnp.max(logits, axis=1, keepdims=True)
    lse = jnp.log(jnp.sum(jnp.exp(logits - m), axis=1, keepdims=True)) + m
    picked = jnp.sum(logits * yoh_ref[...], axis=1, keepdims=True)
    # Loss is kept as a (1,1) VMEM block: a scalar SMEM store would need a
    # vector->scalar extract; this single tiny store is negligible.
    loss_ref[...] = jnp.mean(lse - picked, keepdims=True)


def fused_forward(h_rows, wqkv, wo3, wfT, bf, y_onehot):
    return pl.pallas_call(
        fused_kernel,
        out_shape=(jax.ShapeDtypeStruct((ROWS, CLASSES), jnp.float32),
                   jax.ShapeDtypeStruct((1, 1), jnp.float32)),
        grid=(1,),
        in_specs=[
            pl.BlockSpec((BATCH * SEQ, EMBED), lambda i: (0, 0)),
            pl.BlockSpec((EMBED, 3 * HD), lambda i: (0, 0)),
            pl.BlockSpec((N_HEAD, D_HEAD, EMBED), lambda i: (0, 0, 0)),
            pl.BlockSpec((FLAT, CLASSES), lambda i: (0, 0)),
            pl.BlockSpec((1, CLASSES), lambda i: (0, 0)),
            pl.BlockSpec((ROWS, CLASSES), lambda i: (0, 0)),
        ],
        out_specs=(pl.BlockSpec((ROWS, CLASSES), lambda i: (0, 0)),
                   pl.BlockSpec((1, 1), lambda i: (0, 0))),
        compiler_params=pltpu.CompilerParams(
            dimension_semantics=("arbitrary",)),
    )(h_rows, wqkv, wo3, wfT, bf, y_onehot)


# -----------------------------------------------------------------------------
# Full forward (glue: embedding gather, layout plumbing, one-hot labels)
# -----------------------------------------------------------------------------
@jax.jit
def multihead_att_forward(x_idx, y_lbl, params):
    h = params["embed"][x_idx]                                       # (L, B, E)
    # Layout plumbing in the wrapper (XLA): batch-major rows for the kernel.
    h_rows = jnp.transpose(h, (1, 0, 2)).reshape(BATCH * SEQ, EMBED)
    wqkv = jnp.concatenate([params["wqT"], params["wkvT"]], axis=1)  # (E, 3*HD)
    wo3 = params["woT"].reshape(N_HEAD, D_HEAD, EMBED)               # per-head Wo
    y_onehot = jax.nn.one_hot(y_lbl, CLASSES, dtype=jnp.float32)     # (ROWS, C)
    logits, loss = fused_forward(h_rows, wqkv, wo3, params["wfT"],
                                 params["bf"], y_onehot)
    return loss[0, 0], logits


# Pure-JAX reference of the PyTorch forward, for verification.
def reference_forward(x_idx, y_lbl, params):
    h = params["embed"][x_idx]                                       # (L, B, E)
    q = jnp.einsum("lbe,ef->lbf", h, params["wqT"])
    kv = jnp.einsum("lbe,ef->lbf", h, params["wkvT"])
    k, v = kv[..., :HD], kv[..., HD:]
    L, B, _ = h.shape
    q = q.reshape(L, B, N_HEAD, D_HEAD)
    k = k.reshape(L, B, N_HEAD, D_HEAD)
    v = v.reshape(L, B, N_HEAD, D_HEAD)
    s = jnp.einsum("ibnd,jbnd->ijbn", q, k) * SCALE
    p = jax.nn.softmax(s, axis=1)
    av = jnp.einsum("ijbn,jbnd->ibnd", p, v).reshape(L, B, HD)
    out = h + jnp.einsum("lbf,fe->lbe", av, params["woT"])
    flat = out.reshape(-1, EMBED * MAX_LEN)
    logits = flat @ params["wfT"] + params["bf"][0]
    lse = jax.nn.logsumexp(logits, axis=1)
    picked = jnp.take_along_axis(logits, y_lbl[:, None], axis=1)[:, 0]
    return jnp.mean(lse - picked), logits


def init_params(key):
    ks = jax.random.split(key, 6)
    embed = jax.random.normal(ks[0], (VOCAB, EMBED), jnp.float32)          # nn.Embedding ~ N(0,1)
    wqT = jax.random.normal(ks[1], (EMBED, HD), jnp.float32) * 0.1         # q_net.weight.T
    wkvT = jax.random.normal(ks[2], (EMBED, 2 * HD), jnp.float32) * 0.1    # kv_net.weight.T
    woT = jax.random.normal(ks[3], (HD, EMBED), jnp.float32) * 0.1         # o_net.weight.T
    wfT = jax.random.normal(ks[4], (FLAT, CLASSES), jnp.float32) * 0.05    # final.weight.T
    bf = jax.random.normal(ks[5], (1, CLASSES), jnp.float32) * 0.05        # final.bias
    return {"embed": embed, "wqT": wqT, "wkvT": wkvT, "woT": woT,
            "wfT": wfT, "bf": bf}


if __name__ == "__main__":
    key = jax.random.PRNGKey(0)
    kp, kx, ky = jax.random.split(key, 3)

    params = init_params(kp)
    # x_: token ids, shape (seq, batch)  (dim0 = 'i' of einsum 'ibnd').
    x_idx = jax.random.randint(kx, (SEQ, BATCH), 0, VOCAB, dtype=jnp.int32)
    # rows of the final .view: SEQ*BATCH*EMBED / (EMBED*MAX_LEN) = BATCH
    y_lbl = jax.random.randint(ky, (ROWS,), 0, CLASSES, dtype=jnp.int32)

    loss, logits = multihead_att_forward(x_idx, y_lbl, params)
    jax.block_until_ready((loss, logits))

    ref_loss, ref_logits = reference_forward(x_idx, y_lbl, params)
    # 2e-3 tolerance: the kernel softmax uses the EUP approximate reciprocal.
    assert jnp.allclose(logits, ref_logits, rtol=2e-3, atol=2e-3), "logits mismatch"
    assert jnp.allclose(loss, ref_loss, rtol=2e-3, atol=2e-3), "loss mismatch"

    print("KERNEL_OK")
</pallas_src>

<mosaic_0001>
module attributes {stable_mosaic.version = 11 : i64} {
  func.func @fused_kernel(%arg0: i32, %arg1: memref<16x16xf32, #tpu.memory_space<vmem>>, %arg2: memref<16x12xf32, #tpu.memory_space<vmem>>, %arg3: memref<2x2x16xf32, #tpu.memory_space<vmem>>, %arg4: memref<128x2xf32, #tpu.memory_space<vmem>>, %arg5: memref<1x2xf32, #tpu.memory_space<vmem>>, %arg6: memref<2x2xf32, #tpu.memory_space<vmem>>, %arg7: memref<2x2xf32, #tpu.memory_space<vmem>>, %arg8: memref<1x1xf32, #tpu.memory_space<vmem>>) attributes {dimension_semantics = [#tpu.dimension_semantics<arbitrary>], iteration_bounds = array<i64: 1>, scalar_prefetch = 0 : i64, scratch_operands = 0 : i64, tpu.core_type = #tpu.core_type<tc>, window_params = [{pipeline_mode = #tpu.pipeline_mode<synchronous>, transform_indices = @transform_0, window_bounds = array<i64: 16, 16>}, {pipeline_mode = #tpu.pipeline_mode<synchronous>, transform_indices = @transform_1, window_bounds = array<i64: 16, 12>}, {pipeline_mode = #tpu.pipeline_mode<synchronous>, transform_indices = @transform_2, window_bounds = array<i64: 2, 2, 16>}, {pipeline_mode = #tpu.pipeline_mode<synchronous>, transform_indices = @transform_3, window_bounds = array<i64: 128, 2>}, {pipeline_mode = #tpu.pipeline_mode<synchronous>, transform_indices = @transform_4, window_bounds = array<i64: 1, 2>}, {pipeline_mode = #tpu.pipeline_mode<synchronous>, transform_indices = @transform_5, window_bounds = array<i64: 2, 2>}, {pipeline_mode = #tpu.pipeline_mode<synchronous>, transform_indices = @transform_6, window_bounds = array<i64: 2, 2>}, {pipeline_mode = #tpu.pipeline_mode<synchronous>, transform_indices = @transform_7, window_bounds = array<i64: 1, 1>}]} {
    %c0 = arith.constant 0 : index
    %c0_0 = arith.constant 0 : index
    %0 = vector.load %arg1[%c0, %c0_0] : memref<16x16xf32, #tpu.memory_space<vmem>>, vector<16x16xf32>
    %c0_1 = arith.constant 0 : index
    %c0_2 = arith.constant 0 : index
    %1 = vector.load %arg2[%c0_1, %c0_2] : memref<16x12xf32, #tpu.memory_space<vmem>>, vector<16x12xf32>
    %cst = arith.constant dense<0.000000e+00> : vector<16x12xf32>
    %2 = tpu.matmul %0, %1, %cst {dimension_numbers = #tpu.dot_dimension_numbers<[1], [0], [0], [1], [0, 0, 1, 1], [], []>} : vector<16x16xf32>, vector<16x12xf32>, vector<16x12xf32> -> vector<16x12xf32>
    %3 = vector.extract_strided_slice %0 {offsets = [0, 0], sizes = [8, 16], strides = [1, 1]} : vector<16x16xf32> to vector<8x16xf32>
    %4 = vector.extract_strided_slice %2 {offsets = [0, 0], sizes = [8, 2], strides = [1, 1]} : vector<16x12xf32> to vector<8x2xf32>
    %5 = vector.extract_strided_slice %2 {offsets = [0, 4], sizes = [8, 2], strides = [1, 1]} : vector<16x12xf32> to vector<8x2xf32>
    %6 = vector.extract_strided_slice %2 {offsets = [0, 8], sizes = [8, 2], strides = [1, 1]} : vector<16x12xf32> to vector<8x2xf32>
    %cst_3 = arith.constant dense<0.000000e+00> : vector<8x8xf32>
    %7 = tpu.matmul %4, %5, %cst_3 {dimension_numbers = #tpu.dot_dimension_numbers<[1], [1], [0], [0], [0, 0, 1, 0], [], []>} : vector<8x2xf32>, vector<8x2xf32>, vector<8x8xf32> -> vector<8x8xf32>
    %cst_4 = arith.constant 0.707106769 : f32
    %8 = vector.broadcast %cst_4 : f32 to vector<8x8xf32>
    %9 = arith.mulf %7, %8 : vector<8x8xf32>
    %cst_5 = arith.constant dense<0xFF800000> : vector<8xf32>
    %10 = vector.multi_reduction <maximumf>, %9, %cst_5 [1] : vector<8x8xf32> to vector<8xf32>
    %11 = vector.shape_cast %10 : vector<8xf32> to vector<8x1xf32>
    %12 = vector.broadcast %11 : vector<8x1xf32> to vector<8x8xf32>
    %13 = arith.subf %9, %12 : vector<8x8xf32>
    %14 = math.exp %13 : vector<8x8xf32>
    %cst_6 = arith.constant dense<0.000000e+00> : vector<8xf32>
    %15 = vector.multi_reduction <add>, %14, %cst_6 [1] : vector<8x8xf32> to vector<8xf32>
    %16 = vector.shape_cast %15 : vector<8xf32> to vector<8x1xf32>
    %17 = tpu.reciprocal %16 {approx = true} : vector<8x1xf32> -> vector<8x1xf32>
    %18 = vector.broadcast %17 : vector<8x1xf32> to vector<8x8xf32>
    %19 = arith.mulf %14, %18 : vector<8x8xf32>
    %cst_7 = arith.constant dense<0.000000e+00> : vector<8x2xf32>
    %20 = tpu.matmul %19, %6, %cst_7 {dimension_numbers = #tpu.dot_dimension_numbers<[1], [0], [0], [1], [0, 0, 1, 1], [], []>} : vector<8x8xf32>, vector<8x2xf32>, vector<8x2xf32> -> vector<8x2xf32>
    %c0_8 = arith.constant 0 : index
    %c0_9 = arith.constant 0 : index
    %c0_10 = arith.constant 0 : index
    %21 = vector.load %arg3[%c0_8, %c0_9, %c0_10] : memref<2x2x16xf32, #tpu.memory_space<vmem>>, vector<1x2x16xf32>
    %22 = vector.shape_cast %21 : vector<1x2x16xf32> to vector<2x16xf32>
    %cst_11 = arith.constant dense<0.000000e+00> : vector<8x16xf32>
    %23 = tpu.matmul %20, %22, %cst_11 {dimension_numbers = #tpu.dot_dimension_numbers<[1], [0], [0], [1], [0, 0, 1, 1], [], []>} : vector<8x2xf32>, vector<2x16xf32>, vector<8x16xf32> -> vector<8x16xf32>
    %24 = arith.addf %3, %23 : vector<8x16xf32>
    %25 = vector.extract_strided_slice %2 {offsets = [0, 2], sizes = [8, 2], strides = [1, 1]} : vector<16x12xf32> to vector<8x2xf32>
    %26 = vector.extract_strided_slice %2 {offsets = [0, 6], sizes = [8, 2], strides = [1, 1]} : vector<16x12xf32> to vector<8x2xf32>
    %27 = vector.extract_strided_slice %2 {offsets = [0, 10], sizes = [8, 2], strides = [1, 1]} : vector<16x12xf32> to vector<8x2xf32>
    %cst_12 = arith.constant dense<0.000000e+00> : vector<8x8xf32>
    %28 = tpu.matmul %25, %26, %cst_12 {dimension_numbers = #tpu.dot_dimension_numbers<[1], [1], [0], [0], [0, 0, 1, 0], [], []>} : vector<8x2xf32>, vector<8x2xf32>, vector<8x8xf32> -> vector<8x8xf32>
    %cst_13 = arith.constant 0.707106769 : f32
    %29 = vector.broadcast %cst_13 : f32 to vector<8x8xf32>
    %30 = arith.mulf %28, %29 : vector<8x8xf32>
    %cst_14 = arith.constant dense<0xFF800000> : vector<8xf32>
    %31 = vector.multi_reduction <maximumf>, %30, %cst_14 [1] : vector<8x8xf32> to vector<8xf32>
    %32 = vector.shape_cast %31 : vector<8xf32> to vector<8x1xf32>
    %33 = vector.broadcast %32 : vector<8x1xf32> to vector<8x8xf32>
    %34 = arith.subf %30, %33 : vector<8x8xf32>
    %35 = math.exp %34 : vector<8x8xf32>
    %cst_15 = arith.constant dense<0.000000e+00> : vector<8xf32>
    %36 = vector.multi_reduction <add>, %35, %cst_15 [1] : vector<8x8xf32> to vector<8xf32>
    %37 = vector.shape_cast %36 : vector<8xf32> to vector<8x1xf32>
    %38 = tpu.reciprocal %37 {approx = true} : vector<8x1xf32> -> vector<8x1xf32>
    %39 = vector.broadcast %38 : vector<8x1xf32> to vector<8x8xf32>
    %40 = arith.mulf %35, %39 : vector<8x8xf32>
    %cst_16 = arith.constant dense<0.000000e+00> : vector<8x2xf32>
    %41 = tpu.matmul %40, %27, %cst_16 {dimension_numbers = #tpu.dot_dimension_numbers<[1], [0], [0], [1], [0, 0, 1, 1], [], []>} : vector<8x8xf32>, vector<8x2xf32>, vector<8x2xf32> -> vector<8x2xf32>
    %c1 = arith.constant 1 : index
    %c0_17 = arith.constant 0 : index
    %c0_18 = arith.constant 0 : index
    %42 = vector.load %arg3[%c1, %c0_17, %c0_18] : memref<2x2x16xf32, #tpu.memory_space<vmem>>, vector<1x2x16xf32>
    %43 = vector.shape_cast %42 : vector<1x2x16xf32> to vector<2x16xf32>
    %cst_19 = arith.constant dense<0.000000e+00> : vector<8x16xf32>
    %44 = tpu.matmul %41, %43, %cst_19 {dimension_numbers = #tpu.dot_dimension_numbers<[1], [0], [0], [1], [0, 0, 1, 1], [], []>} : vector<8x2xf32>, vector<2x16xf32>, vector<8x16xf32> -> vector<8x16xf32>
    %45 = arith.addf %24, %44 : vector<8x16xf32>
    %46 = vector.extract_strided_slice %0 {offsets = [8, 0], sizes = [8, 16], strides = [1, 1]} : vector<16x16xf32> to vector<8x16xf32>
    %47 = vector.extract_strided_slice %2 {offsets = [8, 0], sizes = [8, 2], strides = [1, 1]} : vector<16x12xf32> to vector<8x2xf32>
    %48 = vector.extract_strided_slice %2 {offsets = [8, 4], sizes = [8, 2], strides = [1, 1]} : vector<16x12xf32> to vector<8x2xf32>
    %49 = vector.extract_strided_slice %2 {offsets = [8, 8], sizes = [8, 2], strides = [1, 1]} : vector<16x12xf32> to vector<8x2xf32>
    %cst_20 = arith.constant dense<0.000000e+00> : vector<8x8xf32>
    %50 = tpu.matmul %47, %48, %cst_20 {dimension_numbers = #tpu.dot_dimension_numbers<[1], [1], [0], [0], [0, 0, 1, 0], [], []>} : vector<8x2xf32>, vector<8x2xf32>, vector<8x8xf32> -> vector<8x8xf32>
    %cst_21 = arith.constant 0.707106769 : f32
    %51 = vector.broadcast %cst_21 : f32 to vector<8x8xf32>
    %52 = arith.mulf %50, %51 : vector<8x8xf32>
    %cst_22 = arith.constant dense<0xFF800000> : vector<8xf32>
    %53 = vector.multi_reduction <maximumf>, %52, %cst_22 [1] : vector<8x8xf32> to vector<8xf32>
    %54 = vector.shape_cast %53 : vector<8xf32> to vector<8x1xf32>
    %55 = vector.broadcast %54 : vector<8x1xf32> to vector<8x8xf32>
    %56 = arith.subf %52, %55 : vector<8x8xf32>
    %57 = math.exp %56 : vector<8x8xf32>
    %cst_23 = arith.constant dense<0.000000e+00> : vector<8xf32>
    %58 = vector.multi_reduction <add>, %57, %cst_23 [1] : vector<8x8xf32> to vector<8xf32>
    %59 = vector.shape_cast %58 : vector<8xf32> to vector<8x1xf32>
    %60 = tpu.reciprocal %59 {approx = true} : vector<8x1xf32> -> vector<8x1xf32>
    %61 = vector.broadcast %60 : vector<8x1xf32> to vector<8x8xf32>
    %62 = arith.mulf %57, %61 : vector<8x8xf32>
    %cst_24 = arith.constant dense<0.000000e+00> : vector<8x2xf32>
    %63 = tpu.matmul %62, %49, %cst_24 {dimension_numbers = #tpu.dot_dimension_numbers<[1], [0], [0], [1], [0, 0, 1, 1], [], []>} : vector<8x8xf32>, vector<8x2xf32>, vector<8x2xf32> -> vector<8x2xf32>
    %c0_25 = arith.constant 0 : index
    %c0_26 = arith.constant 0 : index
    %c0_27 = arith.constant 0 : index
    %64 = vector.load %arg3[%c0_25, %c0_26, %c0_27] : memref<2x2x16xf32, #tpu.memory_space<vmem>>, vector<1x2x16xf32>
    %65 = vector.shape_cast %64 : vector<1x2x16xf32> to vector<2x16xf32>
    %cst_28 = arith.constant dense<0.000000e+00> : vector<8x16xf32>
    %66 = tpu.matmul %63, %65, %cst_28 {dimension_numbers = #tpu.dot_dimension_numbers<[1], [0], [0], [1], [0, 0, 1, 1], [], []>} : vector<8x2xf32>, vector<2x16xf32>, vector<8x16xf32> -> vector<8x16xf32>
    %67 = arith.addf %46, %66 : vector<8x16xf32>
    %68 = vector.extract_strided_slice %2 {offsets = [8, 2], sizes = [8, 2], strides = [1, 1]} : vector<16x12xf32> to vector<8x2xf32>
    %69 = vector.extract_strided_slice %2 {offsets = [8, 6], sizes = [8, 2], strides = [1, 1]} : vector<16x12xf32> to vector<8x2xf32>
    %70 = vector.extract_strided_slice %2 {offsets = [8, 10], sizes = [8, 2], strides = [1, 1]} : vector<16x12xf32> to vector<8x2xf32>
    %cst_29 = arith.constant dense<0.000000e+00> : vector<8x8xf32>
    %71 = tpu.matmul %68, %69, %cst_29 {dimension_numbers = #tpu.dot_dimension_numbers<[1], [1], [0], [0], [0, 0, 1, 0], [], []>} : vector<8x2xf32>, vector<8x2xf32>, vector<8x8xf32> -> vector<8x8xf32>
    %cst_30 = arith.constant 0.707106769 : f32
    %72 = vector.broadcast %cst_30 : f32 to vector<8x8xf32>
    %73 = arith.mulf %71, %72 : vector<8x8xf32>
    %cst_31 = arith.constant dense<0xFF800000> : vector<8xf32>
    %74 = vector.multi_reduction <maximumf>, %73, %cst_31 [1] : vector<8x8xf32> to vector<8xf32>
    %75 = vector.shape_cast %74 : vector<8xf32> to vector<8x1xf32>
    %76 = vector.broadcast %75 : vector<8x1xf32> to vector<8x8xf32>
    %77 = arith.subf %73, %76 : vector<8x8xf32>
    %78 = math.exp %77 : vector<8x8xf32>
    %cst_32 = arith.constant dense<0.000000e+00> : vector<8xf32>
    %79 = vector.multi_reduction <add>, %78, %cst_32 [1] : vector<8x8xf32> to vector<8xf32>
    %80 = vector.shape_cast %79 : vector<8xf32> to vector<8x1xf32>
    %81 = tpu.reciprocal %80 {approx = true} : vector<8x1xf32> -> vector<8x1xf32>
    %82 = vector.broadcast %81 : vector<8x1xf32> to vector<8x8xf32>
    %83 = arith.mulf %78, %82 : vector<8x8xf32>
    %cst_33 = arith.constant dense<0.000000e+00> : vector<8x2xf32>
    %84 = tpu.matmul %83, %70, %cst_33 {dimension_numbers = #tpu.dot_dimension_numbers<[1], [0], [0], [1], [0, 0, 1, 1], [], []>} : vector<8x8xf32>, vector<8x2xf32>, vector<8x2xf32> -> vector<8x2xf32>
    %c1_34 = arith.constant 1 : index
    %c0_35 = arith.constant 0 : index
    %c0_36 = arith.constant 0 : index
    %85 = vector.load %arg3[%c1_34, %c0_35, %c0_36] : memref<2x2x16xf32, #tpu.memory_space<vmem>>, vector<1x2x16xf32>
    %86 = vector.shape_cast %85 : vector<1x2x16xf32> to vector<2x16xf32>
    %cst_37 = arith.constant dense<0.000000e+00> : vector<8x16xf32>
    %87 = tpu.matmul %84, %86, %cst_37 {dimension_numbers = #tpu.dot_dimension_numbers<[1], [0], [0], [1], [0, 0, 1, 1], [], []>} : vector<8x2xf32>, vector<2x16xf32>, vector<8x16xf32> -> vector<8x16xf32>
    %88 = arith.addf %67, %87 : vector<8x16xf32>
    %89 = tpu.concatenate %45, %88 in 1 : vector<8x16xf32>, vector<8x16xf32> -> vector<8x32xf32>
    %90 = vector.extract_strided_slice %89 {offsets = [0, 0], sizes = [1, 32], strides = [1, 1]} : vector<8x32xf32> to vector<1x32xf32>
    %91 = vector.extract_strided_slice %89 {offsets = [1, 0], sizes = [1, 32], strides = [1, 1]} : vector<8x32xf32> to vector<1x32xf32>
    %92 = vector.extract_strided_slice %89 {offsets = [2, 0], sizes = [1, 32], strides = [1, 1]} : vector<8x32xf32> to vector<1x32xf32>
    %93 = vector.extract_strided_slice %89 {offsets = [3, 0], sizes = [1, 32], strides = [1, 1]} : vector<8x32xf32> to vector<1x32xf32>
    %94 = tpu.concatenate %90, %91, %92, %93 in 1 : vector<1x32xf32>, vector<1x32xf32>, vector<1x32xf32>, vector<1x32xf32> -> vector<1x128xf32>
    %95 = vector.extract_strided_slice %89 {offsets = [4, 0], sizes = [1, 32], strides = [1, 1]} : vector<8x32xf32> to vector<1x32xf32>
    %96 = vector.extract_strided_slice %89 {offsets = [5, 0], sizes = [1, 32], strides = [1, 1]} : vector<8x32xf32> to vector<1x32xf32>
    %97 = vector.extract_strided_slice %89 {offsets = [6, 0], sizes = [1, 32], strides = [1, 1]} : vector<8x32xf32> to vector<1x32xf32>
    %98 = vector.extract_strided_slice %89 {offsets = [7, 0], sizes = [1, 32], strides = [1, 1]} : vector<8x32xf32> to vector<1x32xf32>
    %99 = tpu.concatenate %95, %96, %97, %98 in 1 : vector<1x32xf32>, vector<1x32xf32>, vector<1x32xf32>, vector<1x32xf32> -> vector<1x128xf32>
    %100 = tpu.concatenate %94, %99 in 0 : vector<1x128xf32>, vector<1x128xf32> -> vector<2x128xf32>
    %c0_38 = arith.constant 0 : index
    %c0_39 = arith.constant 0 : index
    %101 = vector.load %arg4[%c0_38, %c0_39] : memref<128x2xf32, #tpu.memory_space<vmem>>, vector<128x2xf32>
    %cst_40 = arith.constant dense<0.000000e+00> : vector<2x2xf32>
    %102 = tpu.matmul %100, %101, %cst_40 {dimension_numbers = #tpu.dot_dimension_numbers<[1], [0], [0], [1], [0, 0, 1, 1], [], []>} : vector<2x128xf32>, vector<128x2xf32>, vector<2x2xf32> -> vector<2x2xf32>
    %c0_41 = arith.constant 0 : index
    %c0_42 = arith.constant 0 : index
    %103 = vector.load %arg5[%c0_41, %c0_42] : memref<1x2xf32, #tpu.memory_space<vmem>>, vector<1x2xf32>
    %104 = vector.broadcast %103 : vector<1x2xf32> to vector<2x2xf32>
    %105 = arith.addf %102, %104 : vector<2x2xf32>
    %c0_43 = arith.constant 0 : index
    %c0_44 = arith.constant 0 : index
    %106 = vector.load %arg7[%c0_43, %c0_44] : memref<2x2xf32, #tpu.memory_space<vmem>>, vector<2x2xf32>
    tpu.vector_store %arg7[%c0_43, %c0_44], %105 {strides = array<i32>} : memref<2x2xf32, #tpu.memory_space<vmem>>, vector<2x2xf32>,
    %cst_45 = arith.constant dense<0xFF800000> : vector<2xf32>
    %107 = vector.multi_reduction <maximumf>, %105, %cst_45 [1] : vector<2x2xf32> to vector<2xf32>
    %108 = vector.shape_cast %107 : vector<2xf32> to vector<2x1xf32>
    %109 = vector.broadcast %108 : vector<2x1xf32> to vector<2x2xf32>
    %110 = arith.subf %105, %109 : vector<2x2xf32>
    %111 = math.exp %110 : vector<2x2xf32>
    %cst_46 = arith.constant dense<0.000000e+00> : vector<2xf32>
    %112 = vector.multi_reduction <add>, %111, %cst_46 [1] : vector<2x2xf32> to vector<2xf32>
    %113 = vector.shape_cast %112 : vector<2xf32> to vector<2x1xf32>
    %114 = math.log %113 : vector<2x1xf32>
    %115 = arith.addf %114, %108 : vector<2x1xf32>
    %c0_47 = arith.constant 0 : index
    %c0_48 = arith.constant 0 : index
    %116 = vector.load %arg6[%c0_47, %c0_48] : memref<2x2xf32, #tpu.memory_space<vmem>>, vector<2x2xf32>
    %117 = arith.mulf %105, %116 : vector<2x2xf32>
    %cst_49 = arith.constant dense<0.000000e+00> : vector<2xf32>
    %118 = vector.multi_reduction <add>, %117, %cst_49 [1] : vector<2x2xf32> to vector<2xf32>
    %119 = vector.shape_cast %118 : vector<2xf32> to vector<2x1xf32>
    %120 = arith.subf %115, %119 : vector<2x1xf32>
    %121 = vector.shape_cast %120 : vector<2x1xf32> to vector<1x2x1xf32>
    %cst_50 = arith.constant dense<0.000000e+00> : vector<1xf32>
    %122 = vector.multi_reduction <add>, %121, %cst_50 [1, 2] : vector<1x2x1xf32> to vector<1xf32>
    %123 = vector.shape_cast %122 : vector<1xf32> to vector<1x1x1xf32>
    %124 = vector.extract %123[0, 0, 0] : f32 from vector<1x1x1xf32>
    %125 = vector.broadcast %124 : f32 to vector<1x1xf32>
    %cst_51 = arith.constant 2.000000e+00 : f32
    %126 = vector.broadcast %cst_51 : f32 to vector<1x1xf32>
    %127 = arith.divf %125, %126 : vector<1x1xf32>
    %c0_52 = arith.constant 0 : index
    %c0_53 = arith.constant 0 : index
    %128 = vector.load %arg8[%c0_52, %c0_53] : memref<1x1xf32, #tpu.memory_space<vmem>>, vector<1x1xf32>
    tpu.vector_store %arg8[%c0_52, %c0_53], %127 {strides = array<i32>} : memref<1x1xf32, #tpu.memory_space<vmem>>, vector<1x1xf32>,
    return
  }
  func.func @transform_0(%arg0: i32) -> (i32, i32) {
    %c0_i32 = arith.constant 0 : i32
    %c0_i32_0 = arith.constant 0 : i32
    %c0_i32_1 = arith.constant 0 : i32
    return %c0_i32, %c0_i32_0 : i32, i32
  }
  func.func @transform_1(%arg0: i32) -> (i32, i32) {
    %c0_i32 = arith.constant 0 : i32
    %c0_i32_0 = arith.constant 0 : i32
    %c0_i32_1 = arith.constant 0 : i32
    return %c0_i32, %c0_i32_0 : i32, i32
  }
  func.func @transform_2(%arg0: i32) -> (i32, i32, i32) {
    %c0_i32 = arith.constant 0 : i32
    %c0_i32_0 = arith.constant 0 : i32
    %c0_i32_1 = arith.constant 0 : i32
    %c0_i32_2 = arith.constant 0 : i32
    return %c0_i32, %c0_i32_0, %c0_i32_1 : i32, i32, i32
  }
  func.func @transform_3(%arg0: i32) -> (i32, i32) {
    %c0_i32 = arith.constant 0 : i32
    %c0_i32_0 = arith.constant 0 : i32
    %c0_i32_1 = arith.constant 0 : i32
    return %c0_i32, %c0_i32_0 : i32, i32
  }
  func.func @transform_4(%arg0: i32) -> (i32, i32) {
    %c0_i32 = arith.constant 0 : i32
    %c0_i32_0 = arith.constant 0 : i32
    %c0_i32_1 = arith.constant 0 : i32
    return %c0_i32, %c0_i32_0 : i32, i32
  }
  func.func @transform_5(%arg0: i32) -> (i32, i32) {
    %c0_i32 = arith.constant 0 : i32
    %c0_i32_0 = arith.constant 0 : i32
    %c0_i32_1 = arith.constant 0 : i32
    return %c0_i32, %c0_i32_0 : i32, i32
  }
  func.func @transform_6(%arg0: i32) -> (i32, i32) {
    %c0_i32 = arith.constant 0 : i32
    %c0_i32_0 = arith.constant 0 : i32
    %c0_i32_1 = arith.constant 0 : i32
    return %c0_i32, %c0_i32_0 : i32, i32
  }
  func.func @transform_7(%arg0: i32) -> (i32, i32) {
    %c0_i32 = arith.constant 0 : i32
    %c0_i32_0 = arith.constant 0 : i32
    %c0_i32_1 = arith.constant 0 : i32
    return %c0_i32, %c0_i32_0 : i32, i32
  }
}

</mosaic_0001>

<bundles_post_ra>
// kernel: multihead_att_forward.1
= control target key start
LH: loop header
LB: loop body
LE: loop exit
PB: predicated region body
PF: predicated region fallthrough
CT: control target
= control target key end

     0   :  { %13 = vsyncpa [#allocation3], 0  ;;  %vm31_vm0 = vcmask 130048   ;;  %s1822_s0 = inlined_call_operand.vmem [shape: f32[16,16], index: 0, kind: input, shape index: {}]   ;;  %s1823_s1 = inlined_call_operand.vmem [shape: f32[16,12], index: 1, kind: input, shape index: {}]   ;;  %s1824_s2 = inlined_call_operand.vmem [shape: f32[2,2,16], index: 2, kind: input, shape index: {}]   ;;  %s1825_s3 = inlined_call_operand.vmem [shape: f32[128,2], index: 3, kind: input, shape index: {}]   ;;  %s1826_s4 = inlined_call_operand.vmem [shape: f32[1,2], index: 4, kind: input, shape index: {}]   ;;  %s1827_s5 = inlined_call_operand.vmem [shape: f32[2,2], index: 5, kind: input, shape index: {}]   ;;  %s1828_s6 = inlined_call_operand.hbm [shape: f32[2,2], index: 6, kind: output, shape index: {0}]   ;;  %s1829_s7 = inlined_call_operand.hbm [shape: f32[1,1], index: 7, kind: output, shape index: {1}]  }
   0x1   :  { %v29_v0 = vld [vmem:[%s1823_s1] sm:$0xff]  ;;  %v30_v1 = vld [vmem:[%s1823_s1 + $0x8] sm:$0xff] }
   0x2   :  { %v1621_v2 = vld [vmem:[%s1822_s0] sm:$0xff]  ;;  %v1440_v3 = vpack.c.bf16 %v30_v1, %v29_v0 }
   0x3   :  { %1342 = vmatprep.mubr.msk.f32.mxu1 %vm31_vm0, %v1621_v2 }
   0x4   :  { %14 = vsyncpa [#allocation5], 0  ;;  %1441 = vmatprep.subr.bf16.mxu1 %v1440_v3  ;;  %v1628_v4 = vld [vmem:[%s1822_s0 + $0x8] sm:$0xff]  ;;  %v1558_v5 = vmov 0.0   ;;  %vm1559_vm1 = vmmov 0   ;;  %s1560_s0 = smov 124  }
   0x5   :  { %1443 = vmatpush3.bf16.msra.mxu1 %v1440_v3  ;;  %1350 = vmatprep.subr.mxu0 %v1558_v5  ;;  %vm116_vm2 = vcmask 15360   ;;  %vm192_vm3 = vcmask 64512   ;;  %s1561_s1 = smov 120   ;;  %s1562_s9 = smov 122   ;;  %v1661_v18 = vld [vmem:[%s1824_s2] sm:$0x3] }
   0x6   :  { %1345 = vmatprep.subr.mxu1 %v1558_v5  ;;  %1352 = vmatprep.mubr.msk.f32.mxu0 %vm1559_vm1, %v1558_v5  ;;  %s1563_s10 = smov 126   ;;  %vm284_vm4 = vcmask 1041408   ;;  %s1564_s13 = smov 118   ;;  %v1693_v41 = vld [vmem:[%s1824_s2 + $0x2] sm:$0x3]  ;;  %vm1101_vm5 = vcmask 261120  }
   0x7   :  { %s1566_s27 = smov 16   ;;  %s1567_s22 = smov 96   ;;  %vm1103_vm6 = vcmask 523264   ;;  %vm1105_vm7 = vcmask 785408   ;;  %vm1110_vm8 = vcmask 1040384   ;;  %vm1205_vm9 = vcmask 9216  }
   0x8   :  { %1343 = vmatmul.mubr.msk.f32.vlgmr.msra.gmra.mrb[0].mxu1 %vm31_vm0, %v1628_v4  ;;  %s1568_s23 = smov 32   ;;  %s1569_s24 = smov 64   ;;  %vm1225_vm10 = vcmask 1024  }
   0x9   :  { %1347 = vmatprep.mubr.msk.f32.mxu1 %vm1559_vm1, %v1558_v5 }
  0xdb   :  { %v1638_v6 = vpop.f32.mrb[0].mxu1 }
  0xdc   :  { %v1640_v7 = vpop.f32.mrb[1].mxu1 }
  0xdd   :  { %114 = vrot.lane.b32.xlu0 %v1640_v7, %s1560_s0 }
 0x14f   :  { %v115_v8 = vpop.permute.xlu0 %114 }
 0x150   :  { %1346 = vmatpush3.xpose.msk.msra.mxu1 %vm116_vm2, %v115_v8 }
 0x151   :  { %1355 = vmatprep.subr.mxu1 %v1558_v5 }
 0x153   :  { %1348 = vmatmul.mubr.msk.f32.vlgmr.msra.gmra.mrb[2].mxu1 %vm116_vm2, %v1640_v7 }
 0x154   :  { %1357 = vmatprep.mubr.msk.f32.mxu1 %vm1559_vm1, %v1558_v5  ;;  %1356 = vmatpush3.msk.msra.mxu1 %vm284_vm4, %v1661_v18 }
 0x155   :  { %1360 = vmatprep.subr.mxu1 %v1558_v5 }
 0x226   :  { %v187_v9 = vpop.f32.mrb[2].mxu1 }
 0x227   :  { %v191_v10 = vmul.f32 0.70710677, %v187_v9  ;;  %v1349_v11 = vpop.f32.mrb[3].mxu1 }
 0x229   :  { %v193_v12 = vsel %vm192_vm3, %v191_v10, -inf }
 0x22a   :  { %194 = vmax.xlane.f32.xlu0 %v193_v12 }
 0x2b7   :  { %v195_v13 = vpop.xlane.xlu0 %194 }
 0x2b8   :  { %v196_v14 = vsub.f32 %v191_v10, %v195_v13 }
 0x2ba   :  { %v197_v15 = vmul.f32 1.442695, %v196_v14 }
 0x2bc   :  { %1490 = vpow2.f32 %v197_v15 }
 0x2c6   :  { %v1491_v16 = vpop.eup %1490 }
 0x2c7   :  { %v199_v17 = vsel %vm192_vm3, %v1491_v16, 0.0 }
 0x2c8   :  { %200 = vadd.xlane.f32.xlu1 %v199_v17 }
 0x2d9   :  { %204 = vrot.lane.b32.xlu1 %v1640_v7, %s1561_s1 }
 0x2dd   :  { %361 = vrot.lane.b32.xlu1 %v1640_v7, %s1562_s9 }
 0x2e1   :  { %359 = vrot.lane.b32.xlu1 %v1640_v7, %s1563_s10 }
 0x355   :  { %v201_v19 = vpop.xlane.xlu1 %200 }
 0x356   :  { %1492 = vrcp.f32 %v201_v19  ;;  %v1114_v19 = vld [vmem:[%s1825_s3 + $0x10] sm:$0xff] }
 0x359   :  { %v205_v20 = vpop.permute.xlu1 %204 }
 0x35a   :  { %1351 = vmatpush3.msra.mxu0 %v205_v20  ;;  %v1565_v20 = vmov 0.0|0.0  }
 0x35b   :  { %1380 = vmatprep.subr.mxu0 %v1558_v5 }
 0x35d   :  { %v362_v23 = vpop.permute.xlu1 %361 }
 0x360   :  { %v1493_v21 = vpop.eup %1492 }
 0x361   :  { %v203_v22 = vmul.f32 %v1493_v21, %v1491_v16  ;;  %v360_v26 = vpop.permute.xlu1 %359 }
 0x363   :  { %1353 = vmatmul.mubr.msk.f32.vlgmr.msra.gmra.mrb[0].mxu0 %vm192_vm3, %v203_v22 }
 0x364   :  { %1382 = vmatprep.mubr.msk.f32.mxu0 %vm1559_vm1, %v1558_v5 }
 0x436   :  { %v276_v24 = vpop.f32.mrb[0].mxu0 }
 0x437   :  { %v1354_v25 = vpop.f32.mrb[1].mxu0  ;;  %1358 = vmatmul.mubr.msk.f32.vlgmr.msra.gmra.mrb[4].mxu1 %vm116_vm2, %v276_v24 }
 0x438   :  { %1361 = vmatpush3.xpose.msk.msra.mxu1 %vm116_vm2, %v362_v23  ;;  %1362 = vmatprep.mubr.msk.f32.mxu1 %vm1559_vm1, %v1558_v5 }
 0x439   :  { %1365 = vmatprep.subr.mxu1 %v1558_v5 }
 0x43b   :  { %1363 = vmatmul.mubr.msk.f32.vlgmr.msra.gmra.mrb[6].mxu1 %vm116_vm2, %v360_v26  ;;  %v1116_v26 = vld [vmem:[%s1825_s3 + $0x20] sm:$0xff] }
 0x43c   :  { %1367 = vmatprep.mubr.msk.f32.mxu1 %vm1559_vm1, %v1558_v5 }
 0x50e   :  { %v433_v27 = vpop.f32.mrb[6].mxu1 }
 0x50f   :  { %v437_v28 = vmul.f32 0.70710677, %v433_v27  ;;  %v1364_v29 = vpop.f32.mrb[7].mxu1  ;;  %v1117_v27 = vld [vmem:[%s1825_s3 + $0x28] sm:$0xff] }
 0x510   :  { %v1118_v29 = vld [vmem:[%s1825_s3 + $0x30] sm:$0xff] }
 0x511   :  { %v438_v30 = vsel %vm192_vm3, %v437_v28, -inf }
 0x512   :  { %439 = vmax.xlane.f32.xlu1 %v438_v30 }
 0x523   :  { %693 = vrot.lane.b32.xlu1 %v1638_v6, %s1561_s1 }
 0x527   :  { %845 = vrot.lane.b32.xlu1 %v1638_v6, %s1562_s9 }
 0x59f   :  { %v440_v31 = vpop.xlane.xlu1 %439 }
 0x5a0   :  { %v441_v32 = vsub.f32 %v437_v28, %v440_v31  ;;  %v1451_v28 = vpack.c.bf16 %v1117_v27, %v1116_v26  ;;  %v1120_v31 = vld [vmem:[%s1825_s3 + $0x40] sm:$0xff] }
 0x5a2   :  { %v442_v33 = vmul.f32 1.442695, %v441_v32  ;;  %v1121_v32 = vld [vmem:[%s1825_s3 + $0x48] sm:$0xff] }
 0x5a3   :  { %v694_v34 = vpop.permute.xlu1 %693 }
 0x5a4   :  { %1494 = vpow2.f32 %v442_v33  ;;  %1381 = vmatpush3.msra.mxu0 %v694_v34  ;;  %v1457_v33 = vpack.c.bf16 %v1121_v32, %v1120_v31  ;;  %v1122_v34 = vld [vmem:[%s1825_s3 + $0x50] sm:$0xff] }
 0x5a5   :  { %1390 = vmatprep.subr.mxu0 %v1558_v5 }
 0x5a7   :  { %v846_v56 = vpop.permute.xlu1 %845 }
 0x5ae   :  { %v1495_v35 = vpop.eup %1494 }
 0x5af   :  { %v444_v36 = vsel %vm192_vm3, %v1495_v35, 0.0 }
 0x5b0   :  { %445 = vadd.xlane.f32.xlu0 %v444_v36 }
 0x5c6   :  { %449 = vrot.lane.b32.xlu0 %v1640_v7, %s1564_s13 }
 0x5ca   :  { %605 = vrot.lane.b32.xlu0 %v1638_v6, %s1560_s0 }
 0x63d   :  { %v446_v37 = vpop.xlane.xlu0 %445 }
 0x63e   :  { %1496 = vrcp.f32 %v446_v37  ;;  %v1124_v37 = vld [vmem:[%s1825_s3 + $0x60] sm:$0xff] }
 0x641   :  { %v450_v38 = vpop.permute.xlu0 %449 }
 0x642   :  { %1366 = vmatpush3.msra.mxu1 %v450_v38  ;;  %v1125_v38 = vld [vmem:[%s1825_s3 + $0x68] sm:$0xff] }
 0x643   :  { %1370 = vmatprep.subr.mxu1 %v1558_v5 }
 0x645   :  { %v606_v43 = vpop.permute.xlu0 %605 }
 0x648   :  { %v1497_v39 = vpop.eup %1496 }
 0x649   :  { %v448_v40 = vmul.f32 %v1497_v39, %v1495_v35  ;;  %v1123_v35 = vld [vmem:[%s1825_s3 + $0x58] sm:$0xff]  ;;  %v1463_v39 = vpack.c.bf16 %v1125_v38, %v1124_v37 }
 0x64a   :  { %v1460_v36 = vpack.c.bf16 %v1123_v35, %v1122_v34 }
 0x64b   :  { %1368 = vmatmul.mubr.msk.f32.vlgmr.msra.gmra.mrb[8].mxu1 %vm192_vm3, %v448_v40  ;;  %v1126_v40 = vld [vmem:[%s1825_s3 + $0x70] sm:$0xff] }
 0x64c   :  { %1371 = vmatpush3.msk.msra.mxu1 %vm284_vm4, %v1693_v41  ;;  %1372 = vmatprep.mubr.msk.f32.mxu1 %vm1559_vm1, %v1558_v5 }
 0x64d   :  { %1375 = vmatprep.subr.mxu1 %v1558_v5 }
 0x71e   :  { %v521_v42 = vpop.f32.mrb[8].mxu1 }
 0x71f   :  { %v1369_v44 = vpop.f32.mrb[9].mxu1  ;;  %1373 = vmatmul.mubr.msk.f32.vlgmr.msra.gmra.mrb[4].mxu1 %vm116_vm2, %v521_v42 }
 0x720   :  { %1376 = vmatpush3.xpose.msk.msra.mxu1 %vm116_vm2, %v606_v43  ;;  %1377 = vmatprep.mubr.msk.f32.mxu1 %vm1559_vm1, %v1558_v5 }
 0x721   :  { %1385 = vmatprep.subr.mxu1 %v1558_v5 }
 0x723   :  { %1378 = vmatmul.mubr.msk.f32.vlgmr.msra.gmra.mrb[10].mxu1 %vm116_vm2, %v1638_v6 }
 0x724   :  { %1386 = vmatpush3.msk.msra.mxu1 %vm284_vm4, %v1661_v18  ;;  %1387 = vmatprep.mubr.msk.f32.mxu1 %vm1559_vm1, %v1558_v5  ;;  %v1113_v18 = vld [vmem:[%s1825_s3 + $0x8] sm:$0xff] }
 0x725   :  { %1395 = vmatprep.subr.mxu1 %v1558_v5 }
 0x7f2   :  { %v1713_v45 = vpop.f32.mrb[4].mxu1 }
 0x7f3   :  { %v1374_v46 = vpop.f32.mrb[5].mxu1  ;;  %v1468_v43 = vadd.f32 %v1713_v45, %v1621_v2 }
 0x7f6   :  { %v677_v47 = vpop.f32.mrb[10].mxu1 }
 0x7f7   :  { %v681_v48 = vmul.f32 0.70710677, %v677_v47  ;;  %v1379_v49 = vpop.f32.mrb[11].mxu1 }
 0x7f9   :  { %v682_v50 = vsel %vm192_vm3, %v681_v48, -inf }
 0x7fa   :  { %683 = vmax.xlane.f32.xlu0 %v682_v50 }
 0x887   :  { %v684_v51 = vpop.xlane.xlu0 %683 }
 0x888   :  { %v685_v52 = vsub.f32 %v681_v48, %v684_v51 }
 0x88a   :  { %v686_v53 = vmul.f32 1.442695, %v685_v52 }
 0x88c   :  { %1498 = vpow2.f32 %v686_v53 }
 0x896   :  { %v1499_v54 = vpop.eup %1498 }
 0x897   :  { %v688_v55 = vsel %vm192_vm3, %v1499_v54, 0.0 }
 0x898   :  { %689 = vadd.xlane.f32.xlu1 %v688_v55 }
 0x8a9   :  { %843 = vrot.lane.b32.xlu1 %v1638_v6, %s1563_s10 }
 0x925   :  { %v690_v57 = vpop.xlane.xlu1 %689 }
 0x926   :  { %1500 = vrcp.f32 %v690_v57 }
 0x929   :  { %v844_v60 = vpop.permute.xlu1 %843 }
 0x930   :  { %v1501_v58 = vpop.eup %1500 }
 0x931   :  { %v692_v59 = vmul.f32 %v1501_v58, %v1499_v54  ;;  %v1219_v58 = vld [vmem:[%s1827_s5] sm:$0x3] }
 0x933   :  { %1383 = vmatmul.mubr.msk.f32.vlgmr.msra.gmra.mrb[2].mxu0 %vm192_vm3, %v692_v59 }
 0x934   :  { %1391 = vmatpush3.xpose.msk.msra.mxu0 %vm116_vm2, %v846_v56  ;;  %1392 = vmatprep.mubr.msk.f32.mxu0 %vm1559_vm1, %v1558_v5  ;;  %v1292_v56 = vld [vmem:[%s1826_s4] ss:$0 sm:$0xff]  ;;  %s1570_s4 = smov [#allocation2]  }
 0x935   :  { %1444 = vmatprep.subr.bf16.mxu0 %v1565_v20  ;;  %s1247_s5 = sshll.u32 %s1570_s4, 4  ;;  %s1248_s5 = int_to_ptr.vmem [resolvable:$true] %s1247_s5 }
 0x936   :  { %s1510_s28 = scalar_lea.vmem %s1248_s5, 32  ;;  %p1515_p1 = scmp.lt.s32.totalorder %s1248_s5, %s1248_s5 }
 0x937   :  { %1393 = vmatmul.mubr.msk.f32.vlgmr.msra.gmra.mrb[4].mxu0 %vm116_vm2, %v844_v60  ;;  %p1511_p0 = scmp.ne.s32.totalorder %s1248_s5, %s1510_s28  ;;  %p1516_p2 = scmp.lt.s32.totalorder %s1510_s28, %s1510_s28 }
 0x938   :  { %1437 = vmatprep.mubr.msk.f32.mxu0 %vm1559_vm1, %v1558_v5 }
 0x939   :  { %p1517_p3 = por %p1516_p2, %p1515_p1 }
 0x93b   :  { %p1518_p4 = pnand %p1517_p3, %p1511_p0 }
 0xa06   :  { %v765_v61 = vpop.f32.mrb[2].mxu0 }
 0xa07   :  { %v1384_v62 = vpop.f32.mrb[3].mxu0  ;;  %1388 = vmatmul.mubr.msk.f32.vlgmr.msra.gmra.mrb[12].mxu1 %vm116_vm2, %v765_v61 }
 0xa08   :  { %1397 = vmatprep.mubr.msk.f32.mxu1 %vm1559_vm1, %v1558_v5 }
 0xa0a   :  { %v917_v63 = vpop.f32.mrb[4].mxu0 }
 0xa0b   :  { %v921_v0 = vmul.f32 0.70710677, %v917_v63  ;;  %v1394_v1 = vpop.f32.mrb[5].mxu0 }
 0xa0d   :  { %v922_v3 = vsel %vm192_vm3, %v921_v0, -inf }
 0xa0e   :  { %923 = vmax.xlane.f32.xlu1 %v922_v3 }
 0xa9b   :  { %v924_v7 = vpop.xlane.xlu1 %923 }
 0xa9c   :  { %v925_v8 = vsub.f32 %v921_v0, %v924_v7 }
 0xa9e   :  { %v926_v9 = vmul.f32 1.442695, %v925_v8 }
 0xaa0   :  { %1502 = vpow2.f32 %v926_v9 }
 0xaaa   :  { %v1503_v10 = vpop.eup %1502 }
 0xaab   :  { %v928_v11 = vsel %vm192_vm3, %v1503_v10, 0.0 }
 0xaac   :  { %929 = vadd.xlane.f32.xlu0 %v928_v11 }
 0xac2   :  { %933 = vrot.lane.b32.xlu0 %v1638_v6, %s1564_s13  ;;  %v1112_v6 = vld [vmem:[%s1825_s3] sm:$0xff] }
 0xac3   :  { %v1445_v21 = vpack.c.bf16 %v1113_v18, %v1112_v6 }
 0xac5   :  { %1446 = vmatpush3.bf16.msra.mxu0 %v1445_v21 }
 0xac6   :  { %1447 = vmatprep.subr.bf16.mxu0 %v1565_v20 }
 0xb39   :  { %v930_v12 = vpop.xlane.xlu0 %929 }
 0xb3a   :  { %1504 = vrcp.f32 %v930_v12 }
 0xb3d   :  { %v934_v13 = vpop.permute.xlu0 %933 }
 0xb3e   :  { %1396 = vmatpush3.msra.mxu1 %v934_v13 }
 0xb3f   :  { %1400 = vmatprep.subr.mxu1 %v1558_v5 }
 0xb44   :  { %v1505_v14 = vpop.eup %1504 }
 0xb45   :  { %v932_v15 = vmul.f32 %v1505_v14, %v1503_v10 }
 0xb47   :  { %1398 = vmatmul.mubr.msk.f32.vlgmr.msra.gmra.mrb[14].mxu1 %vm192_vm3, %v932_v15 }
 0xb48   :  { %1401 = vmatpush3.msk.msra.mxu1 %vm284_vm4, %v1693_v41  ;;  %1402 = vmatprep.mubr.msk.f32.mxu1 %vm1559_vm1, %v1558_v5  ;;  %v1115_v5 = vld [vmem:[%s1825_s3 + $0x18] sm:$0xff] }
 0xb49   :  { %v1448_v23 = vpack.c.bf16 %v1115_v5, %v1114_v19  ;;  %v1127_v41 = vld [vmem:[%s1825_s3 + $0x78] sm:$0xff] }
 0xb4a   :  { %v1466_v42 = vpack.c.bf16 %v1127_v41, %v1126_v40 }
 0xb4b   :  { %1449 = vmatpush3.bf16.msra.mxu0 %v1448_v23 }
 0xb4c   :  { %1450 = vmatprep.subr.bf16.mxu0 %v1565_v20 }
 0xb4f   :  { %1452 = vmatpush3.bf16.msra.mxu0 %v1451_v28 }
 0xb50   :  { %1453 = vmatprep.subr.bf16.mxu0 %v1565_v20 }
 0xc1a   :  { %v1005_v16 = vpop.f32.mrb[14].mxu1 }
 0xc1b   :  { %v1399_v17 = vpop.f32.mrb[15].mxu1  ;;  %1403 = vmatmul.mubr.msk.f32.vlgmr.msra.gmra.mrb[12].mxu1 %vm116_vm2, %v1005_v16 }
 0xcee   :  { %v1078_v22 = vpop.f32.mrb[12].mxu1 }
 0xcef   :  { %v1469_v24 = vadd.f32 %v1078_v22, %v1628_v4  ;;  %v1404_v25 = vpop.f32.mrb[13].mxu1  ;;  %v1119_v4 = vld [vmem:[%s1825_s3 + $0x38] sm:$0xff] }
 0xcf0   :  { %v1454_v30 = vpack.c.bf16 %v1119_v4, %v1118_v29 }
 0xcf1   :  { %1084 = vrot.lane.b32.xlu0 %v1469_v24, %s1566_s27 }
 0xcf2   :  { %1455 = vmatpush3.bf16.msra.mxu0 %v1454_v30 }
 0xcf3   :  { %1456 = vmatprep.subr.bf16.mxu0 %v1565_v20 }
 0xcf6   :  { %1458 = vmatpush3.bf16.msra.mxu0 %v1457_v33 }
 0xcf7   :  { %1459 = vmatprep.subr.bf16.mxu0 %v1565_v20 }
 0xcfa   :  { %1461 = vmatpush3.bf16.msra.mxu0 %v1460_v36 }
 0xcfb   :  { %1462 = vmatprep.subr.bf16.mxu0 %v1565_v20 }
 0xcfe   :  { %1464 = vmatpush3.bf16.msra.mxu0 %v1463_v39 }
 0xcff   :  { %1465 = vmatprep.subr.bf16.mxu0 %v1565_v20 }
 0xd02   :  { %1467 = vmatpush3.bf16.msra.mxu0 %v1466_v42 }
 0xd63   :  { %v1085_v44 = vpop.permute.xlu0 %1084 }
 0xd64   :  { %v1087_v46 = vsel %vm31_vm0, %v1468_v43, %v1085_v44 }
 0xd65   :  { %v1097_v47 = vrot.slane %v1087_v46, 3  ;;  %v1089_v48 = vrot.slane %v1087_v46, 1  ;;  %v1093_v49 = vrot.slane %v1087_v46, 2 }
 0xd67   :  { %1098 = vrot.lane.b32.xlu1 %v1097_v47, %s1567_s22  ;;  %1090 = vrot.lane.b32.xlu0 %v1089_v48, %s1568_s23 }
 0xd6b   :  { %1094 = vrot.lane.b32.xlu0 %v1093_v49, %s1569_s24 }
 0xdd9   :  { %v1091_v50 = vpop.permute.xlu0 %1090  ;;  %v1099_v53 = vpop.permute.xlu1 %1098 }
 0xdda   :  { %v1102_v51 = vsel %vm1101_vm5, %v1087_v46, %v1091_v50 }
 0xddd   :  { %v1095_v52 = vpop.permute.xlu0 %1094 }
 0xdde   :  { %v1104_v2 = vsel %vm1103_vm6, %v1102_v51, %v1095_v52 }
 0xddf   :  { %v1106_v45 = vsel %vm1105_vm7, %v1104_v2, %v1099_v53 }
 0xde0   :  { %v1108_v54 = vrot.slane %v1106_v45, 3 }
 0xde2   :  { %v1111_v55 = vsel %vm1110_vm8, %v1106_v45, %v1108_v54 }
 0xde3   :  { %1438 = vmatmul.mubr.f32.vlgmr.msra.gmra.mrb[6].mxu0 %v1111_v55 }
 0xeb6   :  { %v1201_v57 = vpop.f32.mrb[6].mxu0 }
 0xeb7   :  { %v1202_v59 = vadd.f32 %v1292_v56, %v1201_v57  ;;  %v1439_v60 = vpop.f32.mrb[7].mxu0 }
 0xeb9   :  { %v1207_v61 = vsel %vm1205_vm9, %v1202_v59, -inf  ;;  %1206 = vst.msk [vmem:[#allocation2] sm:$0x3] %vm1205_vm9, %v1202_v59  ;;  %v1220_v62 = vmul.f32 %v1219_v58, %v1202_v59 }
 0xeba   :  { %1208 = vmax.xlane.f32.xlu0 %v1207_v61 }
 0xebb   :  { %v1221_v63 = vsel %vm1205_vm9, %v1220_v62, 0.0 }
 0xebe   :  { %1222 = vadd.xlane.f32.xlu0 %v1221_v63 }
 0xf47   :  { %v1209_v0 = vpop.xlane.xlu0 %1208 }
 0xf48   :  { %v1210_v1 = vsub.f32 %v1202_v59, %v1209_v0 }
 0xf4a   :  { %v1211_v3 = vmul.f32 1.442695, %v1210_v1 }
 0xf4b   :  { %v1223_v13 = vpop.xlane.xlu0 %1222 }
 0xf4c   :  { %1506 = vpow2.f32 %v1211_v3 }
 0xf56   :  { %v1507_v7 = vpop.eup %1506 }
 0xf57   :  { %v1213_v8 = vsel %vm1205_vm9, %v1507_v7, 0.0 }
 0xf58   :  { %1214 = vadd.xlane.f32.xlu1 %v1213_v8 }
 0xfe5   :  { %v1215_v9 = vpop.xlane.xlu1 %1214 }
 0xfe6   :  { %1508 = vlog2.f32 %v1215_v9 }
 0xff0   :  { %v1509_v10 = vpop.eup %1508 }
 0xff1   :  { %v1217_v11 = vmul.f32 0.6931472, %v1509_v10 }
 0xff3   :  { %v1218_v12 = vadd.f32 %v1217_v11, %v1209_v0 }
 0xff5   :  { %v1224_v14 = vsub.f32 %v1218_v12, %v1223_v13 }
 0xff7   :  { %v1226_v15 = vsel %vm1225_vm10, %v1224_v14, 0.0 }
 0xff8   :  { %1227 = vadd.xlane.f32.xlu0 %v1226_v15 }
 0xff9   :  { %1521 = shalt.err (!%p1518_p4)
}
 0xffa   :  { %s1522_s8 = scalar_lea.hbm %s1828_s6, 32 }
 0xffb   :  { %p1523_p5 = scmp.ne.s32.totalorder %s1828_s6, %s1522_s8  ;;  %p1526_p6 = scmp.lt.u32.totalorder %s1522_s8, %s1828_s6 }
 0xffd   :  { %p1528_p7 = pnand %p1526_p6, %p1523_p5 }
 0xfff   :  { %1531 = shalt.err (!%p1528_p7)
}
0x1000   :  { %1250 = dma.vmem_to_hbm [thread:$0]  %s1248_s5, 32, %s1828_s6, [#allocation3]   ;;  %vm1239_vm11 = vcmask 0  }
0x1001   :  { %s1571_s13 = smov [#allocation4]  }
0x1002   :  { %s1257_s14 = sshll.u32 %s1571_s13, 4  ;;  %s1258_s14 = int_to_ptr.vmem [resolvable:$true] %s1257_s14 }
0x1003   :  { %s1532_s2 = scalar_lea.vmem %s1258_s14, 16  ;;  %s1536_s16 = scalar_lea.vmem %s1258_s14, 32 }
0x1004   :  { %p1533_p8 = scmp.ne.s32.totalorder %s1258_s14, %s1532_s2  ;;  %p1537_p9 = scmp.lt.s32.totalorder %s1258_s14, %s1258_s14 }
0x1005   :  { %p1538_p10 = scmp.lt.s32.totalorder %s1536_s16, %s1532_s2 }
0x1007   :  { %p1539_p11 = por %p1538_p10, %p1537_p9 }
0x1009   :  { %p1540_p12 = pnand %p1539_p11, %p1533_p8 }
0x1085   :  { %v1228_v16 = vpop.xlane.xlu0 %1227 }
0x1086   :  { %v1229_v17 = vrot.slane %v1228_v16, 4 }
0x1088   :  { %v1230_v6 = vadd.f32 %v1229_v17, %v1228_v16 }
0x108a   :  { %v1231_v18 = vrot.slane %v1230_v6, 2 }
0x108c   :  { %v1232_v19 = vadd.f32 %v1231_v18, %v1230_v6 }
0x108e   :  { %v1233_v20 = vrot.slane %v1232_v19, 1 }
0x1090   :  { %v1234_v21 = vadd.f32 %v1233_v20, %v1232_v19 }
0x1092   :  { %1474 = vpush %v1234_v21 }
0x10c3   :  { %s1475_s15 = spop %1474 }
0x10c4   :  { %v1236_v5 = vstv %s1475_s15 }
0x10c5   :  { %v1238_v22 = vmul.f32 0.5, %v1236_v5 }
0x10c7   :  { %1240 = vst.msk [vmem:[#allocation4] sm:$0x1] %vm1239_vm11, %v1238_v22 }
0x10c8   :  { %1543 = shalt.err (!%p1540_p12)
}
0x10c9   :  { %s1544_s18 = scalar_lea.hbm %s1829_s7, 16 }
0x10ca   :  { %p1545_p13 = scmp.ne.s32.totalorder %s1829_s7, %s1544_s18  ;;  %p1548_p0 = scmp.lt.u32.totalorder %s1544_s18, %s1829_s7 }
0x10cc   :  { %p1550_p1 = pnand %p1548_p0, %p1545_p13 }
0x10ce   :  { %1553 = shalt.err (!%p1550_p1)
}
0x10cf   :  { %1260 = dma.vmem_to_hbm [thread:$0]  %s1258_s14, 16, %s1829_s7, [#allocation5]  }
0x10d0   :  { %1554 = dma.done.wait [#allocation3], 32  }
0x10d1   :  { %1555 = vsyncadd [#allocation3], 4294967264 }
0x10d2   :  { %1556 = dma.done.wait [#allocation5], 16  }
0x10d3   :  { %1557 = vsyncadd [#allocation5], 4294967280 }
0x10d4   :  { %1267 = vsyncpa [#allocation3], 1 }
0x10d5   :  { %1268 = vsyncpa [#allocation5], 1 }

</bundles_post_ra>
